<compile_context>
chip_gen: v6e
topology: v6e:2x2x1
jax: 0.10.0
libtpu: 0.0.40
codegen_flags: <defaults>
</compile_context>

<pallas_src>
import jax
import jax.numpy as jnp
from jax.experimental import pallas as pl
from jax.experimental.pallas import tpu as pltpu

STATE_DIM = 6
ACTION_DIM = 2
HIDDEN_DIM = 128
IN_PAD = 8  # state dim zero-padded 6 -> 8 for aligned x-row DMAs


def _round_up(n, m):
    return ((n + m - 1) // m) * m


def actor_kernel(x_ref, w1_ref, b1_ref, w2_ref, b2_ref, w3_ref, b3_ref,
                 mean_ref):
    """relu(x@W1+b1) -> relu(.@W2+b2) -> 1.5*tanh(.@W3+b3), narrow (TB,2) out."""
    cdt = w1_ref.dtype  # MXU input dtype (bf16 recommended on every TPU gen)

    x = x_ref[...].astype(cdt)

    # f32 accumulation + f32 bias/ReLU, then immediately cast to the MXU dtype
    # so only one (TB, HIDDEN) copy stays live into the next matmul.
    h1 = jnp.maximum(
        jnp.dot(x, w1_ref[...], preferred_element_type=jnp.float32)
        + b1_ref[...], 0.0).astype(cdt)
    h2 = jnp.maximum(
        jnp.dot(h1, w2_ref[...], preferred_element_type=jnp.float32)
        + b2_ref[...], 0.0).astype(cdt)

    m = jnp.dot(h2, w3_ref[...], preferred_element_type=jnp.float32) + b3_ref[...]
    mean_ref[...] = (jnp.tanh(m) * 1.5).astype(mean_ref.dtype)


def init_params(key):
    """PyTorch-style params: W (out,in), b (out,), mirroring nn.Linear init."""
    def linear(k, fan_in, fan_out):
        kw, kb = jax.random.split(k)
        bound = 1.0 / jnp.sqrt(jnp.float32(fan_in))
        w = jax.random.uniform(kw, (fan_out, fan_in), jnp.float32, -bound, bound)
        b = jax.random.uniform(kb, (fan_out,), jnp.float32, -bound, bound)
        return w, b

    k1, k2, k3 = jax.random.split(key, 3)
    w1, b1 = linear(k1, STATE_DIM, HIDDEN_DIM)
    w2, b2 = linear(k2, HIDDEN_DIM, HIDDEN_DIM)
    w3, b3 = linear(k3, HIDDEN_DIM, ACTION_DIM)
    log_std = jnp.zeros((ACTION_DIM,), jnp.float32)
    return (w1, b1, w2, b2, w3, b3, log_std)


def prepare_params(params, compute_dtype=jnp.bfloat16):
    """Transpose to (in,out), zero-pad W1's input rows 6->8, cast weights to the
    MXU compute dtype (bf16 recommended on all generations — the MXU is
    bf16-native everywhere; f32 MXU inputs are emulated and ~3x slower).
    Biases stay f32 since accumulation / elementwise math stays f32."""
    W1, b1, W2, b2, W3, b3, log_std = params
    w1p = jnp.zeros((IN_PAD, HIDDEN_DIM), compute_dtype)
    w1p = w1p.at[:STATE_DIM, :].set(W1.T.astype(compute_dtype))
    w2 = W2.T.astype(compute_dtype)
    w3 = W3.T.astype(compute_dtype)                    # (HIDDEN_DIM, ACTION_DIM)
    b1r = b1.reshape(1, HIDDEN_DIM).astype(jnp.float32)
    b2r = b2.reshape(1, HIDDEN_DIM).astype(jnp.float32)
    b3r = b3.reshape(1, ACTION_DIM).astype(jnp.float32)
    return (w1p, b1r, w2, b2r, w3, b3r, log_std)


def actor_forward(s, kparams, *, block_b=2048):
    """s: (B, STATE_DIM) f32. Returns (mean (B, ACTION_DIM) f32, std (ACTION_DIM,) f32)."""
    w1, b1, w2, b2, w3, b3, log_std = kparams
    B = s.shape[0]

    TB = _round_up(min(block_b, B), 8)          # batch tile, multiple of 8
    if B >= 16:
        # Guarantee >=2 grid steps so v7x's two TensorCores both get work.
        TB = min(TB, _round_up(pl.cdiv(B, 2), 8))
    Bp = _round_up(B, TB)

    # Pad batch rows to the tile and state columns 6 -> 8 (zero cols x zero
    # W1 rows => no effect on the result).
    s = jnp.pad(s, ((0, Bp - B), (0, IN_PAD - STATE_DIM)))
    grid = (Bp // TB,)

    operands = (s, w1, b1, w2, b2, w3, b3)
    cost = pl.CostEstimate(
        flops=2 * Bp * (IN_PAD * HIDDEN_DIM
                        + HIDDEN_DIM * HIDDEN_DIM
                        + HIDDEN_DIM * ACTION_DIM),
        transcendentals=Bp * ACTION_DIM,
        bytes_accessed=(sum(int(a.size) * a.dtype.itemsize for a in operands)
                        + Bp * ACTION_DIM * 4),
    )

    # Rough per-call VMEM footprint (lane-padded tiles: double-buffered x/out
    # blocks + spill headroom for the (TB,128) intermediates + weights).
    lane_row_bytes = 128 * 4
    est_vmem = 8 * TB * lane_row_bytes + (1 << 20)
    cp_kwargs = dict(dimension_semantics=("parallel",))
    if est_vmem > 12 * 1024 * 1024:   # v5e default scoped VMEM is only 16 MiB
        cp_kwargs["vmem_limit_bytes"] = min(2 * est_vmem, 64 * 1024 * 1024)

    mean = pl.pallas_call(
        actor_kernel,
        out_shape=jax.ShapeDtypeStruct((Bp, ACTION_DIM), jnp.float32),
        grid=grid,
        in_specs=[
            pl.BlockSpec((TB, IN_PAD), lambda i: (i, 0)),              # x tile
            pl.BlockSpec((IN_PAD, HIDDEN_DIM), lambda i: (0, 0)),      # w1 (resident)
            pl.BlockSpec((1, HIDDEN_DIM), lambda i: (0, 0)),           # b1
            pl.BlockSpec((HIDDEN_DIM, HIDDEN_DIM), lambda i: (0, 0)),  # w2
            pl.BlockSpec((1, HIDDEN_DIM), lambda i: (0, 0)),           # b2
            pl.BlockSpec((HIDDEN_DIM, ACTION_DIM), lambda i: (0, 0)),  # w3 (narrow)
            pl.BlockSpec((1, ACTION_DIM), lambda i: (0, 0)),           # b3
        ],
        out_specs=pl.BlockSpec((TB, ACTION_DIM), lambda i: (i, 0)),
        compiler_params=pltpu.CompilerParams(**cp_kwargs),
        cost_estimate=cost,
    )(*operands)

    mean = mean[:B]               # drop padded rows only (no lane slice needed)
    std = jnp.exp(log_std)        # batch-independent: done in plain JAX
    return mean, std


def reference_forward(s, params):
    """Plain-JAX f32 reference of the PyTorch forward."""
    W1, b1, W2, b2, W3, b3, log_std = params
    x = jnp.maximum(s @ W1.T + b1, 0.0)
    x = jnp.maximum(x @ W2.T + b2, 0.0)
    mean = jnp.tanh(x @ W3.T + b3) * 1.5
    return mean, jnp.exp(log_std)


if __name__ == "__main__":
    key = jax.random.PRNGKey(0)
    kp, kx = jax.random.split(key)

    params = init_params(kp)

    # Small batch, single tile.
    B = 8
    s = jax.random.normal(kx, (B, STATE_DIM), jnp.float32)
    mean_ref, std_ref = reference_forward(s, params)

    # f32-weight path: matches the reference tightly.
    mean32, std32 = actor_forward(s, prepare_params(params, jnp.float32))
    jax.block_until_ready((mean32, std32))
    assert mean32.shape == (B, ACTION_DIM) and std32.shape == (ACTION_DIM,)
    assert jnp.allclose(mean32, mean_ref, atol=1e-5, rtol=1e-5)
    assert jnp.allclose(std32, std_ref, atol=1e-6, rtol=1e-6)

    # Default bf16 MXU-input path (recommended on v5e/v6e/v7x), f32 accumulation.
    mean16, std16 = actor_forward(s, prepare_params(params))
    jax.block_until_ready((mean16, std16))
    assert jnp.allclose(mean16, mean_ref, atol=5e-2, rtol=5e-2)
    assert jnp.allclose(std16, std_ref, atol=1e-6, rtol=1e-6)

    # Multi-tile batch: exercises row padding and >=2 parallel grid steps.
    B2 = 100
    s2 = jax.random.normal(kx, (B2, STATE_DIM), jnp.float32)
    m2, _ = actor_forward(s2, prepare_params(params, jnp.float32), block_b=64)
    jax.block_until_ready(m2)
    m2_ref, _ = reference_forward(s2, params)
    assert m2.shape == (B2, ACTION_DIM)
    assert jnp.allclose(m2, m2_ref, atol=1e-5, rtol=1e-5)

    print("KERNEL_OK")
</pallas_src>

<mosaic_0001>
module attributes {stable_mosaic.version = 11 : i64} {
  func.func @actor_kernel(%arg0: i32, %arg1: memref<8x8xf32, #tpu.memory_space<vmem>>, %arg2: memref<8x128xf32, #tpu.memory_space<vmem>>, %arg3: memref<1x128xf32, #tpu.memory_space<vmem>>, %arg4: memref<128x128xf32, #tpu.memory_space<vmem>>, %arg5: memref<1x128xf32, #tpu.memory_space<vmem>>, %arg6: memref<128x2xf32, #tpu.memory_space<vmem>>, %arg7: memref<1x2xf32, #tpu.memory_space<vmem>>, %arg8: memref<8x2xf32, #tpu.memory_space<vmem>>) attributes {dimension_semantics = [#tpu.dimension_semantics<parallel>], iteration_bounds = array<i64: 1>, scalar_prefetch = 0 : i64, scratch_operands = 0 : i64, tpu.core_type = #tpu.core_type<tc>, window_params = [{transform_indices = @transform_0, window_bounds = array<i64: 8, 8>}, {pipeline_mode = #tpu.pipeline_mode<synchronous>, transform_indices = @transform_1, window_bounds = array<i64: 8, 128>}, {pipeline_mode = #tpu.pipeline_mode<synchronous>, transform_indices = @transform_2, window_bounds = array<i64: 1, 128>}, {pipeline_mode = #tpu.pipeline_mode<synchronous>, transform_indices = @transform_3, window_bounds = array<i64: 128, 128>}, {pipeline_mode = #tpu.pipeline_mode<synchronous>, transform_indices = @transform_4, window_bounds = array<i64: 1, 128>}, {pipeline_mode = #tpu.pipeline_mode<synchronous>, transform_indices = @transform_5, window_bounds = array<i64: 128, 2>}, {pipeline_mode = #tpu.pipeline_mode<synchronous>, transform_indices = @transform_6, window_bounds = array<i64: 1, 2>}, {transform_indices = @transform_7, window_bounds = array<i64: 8, 2>}]} {
    %c0 = arith.constant 0 : index
    %c0_0 = arith.constant 0 : index
    %0 = vector.load %arg1[%c0, %c0_0] : memref<8x8xf32, #tpu.memory_space<vmem>>, vector<8x8xf32>
    %c0_1 = arith.constant 0 : index
    %c0_2 = arith.constant 0 : index
    %1 = vector.load %arg2[%c0_1, %c0_2] : memref<8x128xf32, #tpu.memory_space<vmem>>, vector<8x128xf32>
    %cst = arith.constant dense<0.000000e+00> : vector<8x128xf32>
    %2 = tpu.matmul %0, %1, %cst {dimension_numbers = #tpu.dot_dimension_numbers<[1], [0], [0], [1], [0, 0, 1, 1], [], []>} : vector<8x8xf32>, vector<8x128xf32>, vector<8x128xf32> -> vector<8x128xf32>
    %c0_3 = arith.constant 0 : index
    %c0_4 = arith.constant 0 : index
    %3 = vector.load %arg3[%c0_3, %c0_4] : memref<1x128xf32, #tpu.memory_space<vmem>>, vector<1x128xf32>
    %4 = vector.broadcast %3 : vector<1x128xf32> to vector<8x128xf32>
    %5 = arith.addf %2, %4 : vector<8x128xf32>
    %cst_5 = arith.constant 0.000000e+00 : f32
    %6 = vector.broadcast %cst_5 : f32 to vector<8x128xf32>
    %7 = arith.maximumf %5, %6 : vector<8x128xf32>
    %c0_6 = arith.constant 0 : index
    %c0_7 = arith.constant 0 : index
    %8 = vector.load %arg4[%c0_6, %c0_7] : memref<128x128xf32, #tpu.memory_space<vmem>>, vector<128x128xf32>
    %cst_8 = arith.constant dense<0.000000e+00> : vector<8x128xf32>
    %9 = tpu.matmul %7, %8, %cst_8 {dimension_numbers = #tpu.dot_dimension_numbers<[1], [0], [0], [1], [0, 0, 1, 1], [], []>} : vector<8x128xf32>, vector<128x128xf32>, vector<8x128xf32> -> vector<8x128xf32>
    %c0_9 = arith.constant 0 : index
    %c0_10 = arith.constant 0 : index
    %10 = vector.load %arg5[%c0_9, %c0_10] : memref<1x128xf32, #tpu.memory_space<vmem>>, vector<1x128xf32>
    %11 = vector.broadcast %10 : vector<1x128xf32> to vector<8x128xf32>
    %12 = arith.addf %9, %11 : vector<8x128xf32>
    %cst_11 = arith.constant 0.000000e+00 : f32
    %13 = vector.broadcast %cst_11 : f32 to vector<8x128xf32>
    %14 = arith.maximumf %12, %13 : vector<8x128xf32>
    %c0_12 = arith.constant 0 : index
    %c0_13 = arith.constant 0 : index
    %15 = vector.load %arg6[%c0_12, %c0_13] : memref<128x2xf32, #tpu.memory_space<vmem>>, vector<128x2xf32>
    %cst_14 = arith.constant dense<0.000000e+00> : vector<8x2xf32>
    %16 = tpu.matmul %14, %15, %cst_14 {dimension_numbers = #tpu.dot_dimension_numbers<[1], [0], [0], [1], [0, 0, 1, 1], [], []>} : vector<8x128xf32>, vector<128x2xf32>, vector<8x2xf32> -> vector<8x2xf32>
    %c0_15 = arith.constant 0 : index
    %c0_16 = arith.constant 0 : index
    %17 = vector.load %arg7[%c0_15, %c0_16] : memref<1x2xf32, #tpu.memory_space<vmem>>, vector<1x2xf32>
    %18 = vector.broadcast %17 : vector<1x2xf32> to vector<8x2xf32>
    %19 = arith.addf %16, %18 : vector<8x2xf32>
    %20 = math.tanh %19 : vector<8x2xf32>
    %cst_17 = arith.constant 1.500000e+00 : f32
    %21 = vector.broadcast %cst_17 : f32 to vector<8x2xf32>
    %22 = arith.mulf %20, %21 : vector<8x2xf32>
    %c0_18 = arith.constant 0 : index
    %c0_19 = arith.constant 0 : index
    %23 = vector.load %arg8[%c0_18, %c0_19] : memref<8x2xf32, #tpu.memory_space<vmem>>, vector<8x2xf32>
    tpu.vector_store %arg8[%c0_18, %c0_19], %22 {strides = array<i32>} : memref<8x2xf32, #tpu.memory_space<vmem>>, vector<8x2xf32>,
    return
  }
  func.func @transform_0(%arg0: i32) -> (i32, i32) {
    %c0_i32 = arith.constant 0 : i32
    %c0_i32_0 = arith.constant 0 : i32
    return %arg0, %c0_i32 : i32, i32
  }
  func.func @transform_1(%arg0: i32) -> (i32, i32) {
    %c0_i32 = arith.constant 0 : i32
    %c0_i32_0 = arith.constant 0 : i32
    %c0_i32_1 = arith.constant 0 : i32
    return %c0_i32, %c0_i32_0 : i32, i32
  }
  func.func @transform_2(%arg0: i32) -> (i32, i32) {
    %c0_i32 = arith.constant 0 : i32
    %c0_i32_0 = arith.constant 0 : i32
    %c0_i32_1 = arith.constant 0 : i32
    return %c0_i32, %c0_i32_0 : i32, i32
  }
  func.func @transform_3(%arg0: i32) -> (i32, i32) {
    %c0_i32 = arith.constant 0 : i32
    %c0_i32_0 = arith.constant 0 : i32
    %c0_i32_1 = arith.constant 0 : i32
    return %c0_i32, %c0_i32_0 : i32, i32
  }
  func.func @transform_4(%arg0: i32) -> (i32, i32) {
    %c0_i32 = arith.constant 0 : i32
    %c0_i32_0 = arith.constant 0 : i32
    %c0_i32_1 = arith.constant 0 : i32
    return %c0_i32, %c0_i32_0 : i32, i32
  }
  func.func @transform_5(%arg0: i32) -> (i32, i32) {
    %c0_i32 = arith.constant 0 : i32
    %c0_i32_0 = arith.constant 0 : i32
    %c0_i32_1 = arith.constant 0 : i32
    return %c0_i32, %c0_i32_0 : i32, i32
  }
  func.func @transform_6(%arg0: i32) -> (i32, i32) {
    %c0_i32 = arith.constant 0 : i32
    %c0_i32_0 = arith.constant 0 : i32
    %c0_i32_1 = arith.constant 0 : i32
    return %c0_i32, %c0_i32_0 : i32, i32
  }
  func.func @transform_7(%arg0: i32) -> (i32, i32) {
    %c0_i32 = arith.constant 0 : i32
    %c0_i32_0 = arith.constant 0 : i32
    return %arg0, %c0_i32 : i32, i32
  }
}

</mosaic_0001>

<bundles_post_ra>
// kernel: tpu_custom_call.1
= control target key start
LH: loop header
LB: loop body
LE: loop exit
PB: predicated region body
PF: predicated region fallthrough
CT: control target
= control target key end

     0   :  { %12 = vsyncpa [#allocation3], 0  ;;  %s693_s0 = inlined_call_operand.hbm [shape: f32[8,8], index: 0, kind: input, shape index: {}]   ;;  %s694_s1 = inlined_call_operand.hbm [shape: f32[8,128], index: 1, kind: input, shape index: {}]   ;;  %s695_s2 = inlined_call_operand.vmem [shape: f32[1,128], index: 2, kind: input, shape index: {}]   ;;  %s696_s3 = inlined_call_operand.vmem [shape: f32[128,128], index: 3, kind: input, shape index: {}]   ;;  %s697_s4 = inlined_call_operand.vmem [shape: f32[1,128], index: 4, kind: input, shape index: {}]   ;;  %s698_s5 = inlined_call_operand.vmem [shape: f32[128,2], index: 5, kind: input, shape index: {}]   ;;  %s699_s6 = inlined_call_operand.vmem [shape: f32[1,2], index: 6, kind: input, shape index: {}]   ;;  %s700_s7 = inlined_call_operand.vmem [shape: f32[8,2], index: 7, kind: output, shape index: {}]  }
   0x1   :  { %13 = vsyncpa [#allocation5], 0  ;;  %s496_s24 = smov [#allocation2]   ;;  %s497_s26 = smov [#allocation4]  }
   0x2   :  { %s20_s25 = sshll.u32 %s496_s24, 4  ;;  %s30_s27 = sshll.u32 %s497_s26, 4  ;;  %s21_s25 = int_to_ptr.vmem [resolvable:$true] %s20_s25  ;;  %s31_s27 = int_to_ptr.vmem [resolvable:$true] %s30_s27 }
   0x3   :  { %s460_s28 = scalar_lea.vmem %s21_s25, 128  ;;  %p465_p1 = scmp.lt.s32.totalorder %s21_s25, %s21_s25 }
   0x4   :  { %p461_p0 = scmp.ne.s32.totalorder %s21_s25, %s460_s28  ;;  %p466_p2 = scmp.lt.s32.totalorder %s460_s28, %s460_s28 }
   0x6   :  { %p467_p3 = por %p466_p2, %p465_p1 }
   0x8   :  { %p468_p4 = pnand %p467_p3, %p461_p0 }
   0xa   :  { %471 = shalt.err (!%p468_p4)
}
   0xb   :  { %23 = dma.hbm_to_vmem [thread:$0]  %s693_s0, 128, %s21_s25, [#allocation3]  }
   0xc   :  { %s480_s8 = scalar_lea.vmem %s31_s27, 128  ;;  %p485_p6 = scmp.lt.s32.totalorder %s31_s27, %s31_s27 }
   0xd   :  { %p481_p5 = scmp.ne.s32.totalorder %s31_s27, %s480_s8  ;;  %p486_p7 = scmp.lt.s32.totalorder %s480_s8, %s480_s8 }
   0xf   :  { %p487_p8 = por %p486_p7, %p485_p6 }
  0x11   :  { %p488_p9 = pnand %p487_p8, %p481_p5 }
  0x13   :  { %491 = shalt.err (!%p488_p9)
}
  0x14   :  { %33 = dma.hbm_to_vmem [thread:$0]  %s694_s1, 128, %s31_s27, [#allocation5]  }
  0x15   :  { %492 = dma.done.wait [#allocation3], 128  }
  0x16   :  { %493 = vsyncadd [#allocation3], 4294967168 }
  0x17   :  { %494 = dma.done.wait [#allocation5], 128  }
  0x18   :  { %495 = vsyncadd [#allocation5], 4294967168  ;;  %v498_v0 = vmov 0.0   ;;  %vm499_vm0 = vmmov 0   ;;  %vm59_vm1 = vcmask 64512   ;;  %v51_v1 = vld [vmem:[#allocation4] sm:$0xff] }
  0x19   :  { %371 = vmatprep.subr.mxu0 %v498_v0  ;;  %373 = vmatprep.mubr.msk.f32.mxu0 %vm499_vm0, %v498_v0  ;;  %v50_v2 = vld [vmem:[#allocation2] sm:$0xff]  ;;  %v149_v3 = vld [vmem:[%s696_s3 + $0x78] sm:$0xff]  ;;  %v148_v4 = vld [vmem:[%s696_s3 + $0x70] sm:$0xff]  ;;  %vm323_vm2 = vcmask 15360  }
  0x1a   :  { %376 = vmatprep.subr.mxu1 %v498_v0  ;;  %408 = vmatprep.mubr.msk.f32.mxu1 %vm499_vm0, %v498_v0  ;;  %v147_v5 = vld [vmem:[%s696_s3 + $0x68] sm:$0xff]  ;;  %v146_v6 = vld [vmem:[%s696_s3 + $0x60] sm:$0xff]  ;;  %v145_v7 = vld [vmem:[%s696_s3 + $0x58] sm:$0xff] }
  0x1b   :  { %372 = vmatpush3.msra.mxu0 %v51_v1  ;;  %377 = vmatpush3.msra.mxu1 %v149_v3  ;;  %v144_v8 = vld [vmem:[%s696_s3 + $0x50] sm:$0xff]  ;;  %v143_v9 = vld [vmem:[%s696_s3 + $0x48] sm:$0xff]  ;;  %v142_v10 = vld [vmem:[%s696_s3 + $0x40] sm:$0xff] }
  0x1c   :  { %374 = vmatmul.mubr.msk.f32.vlgmr.msra.gmra.mxu0 %vm59_vm1, %v50_v2  ;;  %378 = vmatprep.subr.mxu1 %v498_v0  ;;  %v141_v11 = vld [vmem:[%s696_s3 + $0x38] sm:$0xff]  ;;  %v140_v12 = vld [vmem:[%s696_s3 + $0x30] sm:$0xff]  ;;  %v139_v13 = vld [vmem:[%s696_s3 + $0x28] sm:$0xff] }
  0x1d   :  { %379 = vmatpush3.msra.mxu1 %v148_v4  ;;  %411 = vmatprep.subr.mxu0 %v498_v0  ;;  %v138_v14 = vld [vmem:[%s696_s3 + $0x20] sm:$0xff]  ;;  %v137_v15 = vld [vmem:[%s696_s3 + $0x18] sm:$0xff]  ;;  %v136_v16 = vld [vmem:[%s696_s3 + $0x10] sm:$0xff] }
  0x1e   :  { %380 = vmatprep.subr.mxu1 %v498_v0  ;;  %443 = vmatprep.mubr.msk.f32.mxu0 %vm499_vm0, %v498_v0  ;;  %v135_v17 = vld [vmem:[%s696_s3 + $0x8] sm:$0xff]  ;;  %v134_v18 = vld [vmem:[%s696_s3] sm:$0xff]  ;;  %v243_v19 = vld [vmem:[%s698_s5 + $0x78] sm:$0xff] }
  0x1f   :  { %381 = vmatpush3.msra.mxu1 %v147_v5  ;;  %v242_v20 = vld [vmem:[%s698_s5 + $0x70] sm:$0xff]  ;;  %412 = vmatpush3.msra.mxu0 %v243_v19  ;;  %v241_v21 = vld [vmem:[%s698_s5 + $0x68] sm:$0xff]  ;;  %v240_v22 = vld [vmem:[%s698_s5 + $0x60] sm:$0xff] }
  0x20   :  { %382 = vmatprep.subr.mxu1 %v498_v0  ;;  %413 = vmatprep.subr.mxu0 %v498_v0  ;;  %v239_v23 = vld [vmem:[%s698_s5 + $0x58] sm:$0xff]  ;;  %v238_v24 = vld [vmem:[%s698_s5 + $0x50] sm:$0xff]  ;;  %v237_v25 = vld [vmem:[%s698_s5 + $0x48] sm:$0xff] }
  0x21   :  { %383 = vmatpush3.msra.mxu1 %v146_v6  ;;  %414 = vmatpush3.msra.mxu0 %v242_v20  ;;  %v236_v26 = vld [vmem:[%s698_s5 + $0x40] sm:$0xff]  ;;  %v235_v27 = vld [vmem:[%s698_s5 + $0x38] sm:$0xff]  ;;  %v234_v28 = vld [vmem:[%s698_s5 + $0x30] sm:$0xff] }
  0x22   :  { %384 = vmatprep.subr.mxu1 %v498_v0  ;;  %415 = vmatprep.subr.mxu0 %v498_v0  ;;  %v233_v29 = vld [vmem:[%s698_s5 + $0x28] sm:$0xff]  ;;  %v232_v30 = vld [vmem:[%s698_s5 + $0x20] sm:$0xff]  ;;  %v231_v31 = vld [vmem:[%s698_s5 + $0x18] sm:$0xff] }
  0x23   :  { %385 = vmatpush3.msra.mxu1 %v145_v7  ;;  %416 = vmatpush3.msra.mxu0 %v241_v21  ;;  %v331_v32 = vld [vmem:[%s695_s2] ss:$0 sm:$0xff]  ;;  %v230_v37 = vld [vmem:[%s698_s5 + $0x10] sm:$0xff]  ;;  %v229_v38 = vld [vmem:[%s698_s5 + $0x8] sm:$0xff] }
  0x24   :  { %386 = vmatprep.subr.mxu1 %v498_v0  ;;  %417 = vmatprep.subr.mxu0 %v498_v0  ;;  %v228_v39 = vld [vmem:[%s698_s5] sm:$0xff] }
  0x25   :  { %387 = vmatpush3.msra.mxu1 %v144_v8  ;;  %418 = vmatpush3.msra.mxu0 %v240_v22  ;;  %v333_v40 = vld [vmem:[%s697_s4] ss:$0 sm:$0xff] }
  0x26   :  { %388 = vmatprep.subr.mxu1 %v498_v0  ;;  %419 = vmatprep.subr.mxu0 %v498_v0  ;;  %v334_v45 = vld [vmem:[%s699_s6] ss:$0 sm:$0xff] }
  0x27   :  { %389 = vmatpush3.msra.mxu1 %v143_v9  ;;  %420 = vmatpush3.msra.mxu0 %v239_v23 }
  0x28   :  { %390 = vmatprep.subr.mxu1 %v498_v0  ;;  %421 = vmatprep.subr.mxu0 %v498_v0 }
  0x29   :  { %391 = vmatpush3.msra.mxu1 %v142_v10  ;;  %422 = vmatpush3.msra.mxu0 %v238_v24 }
  0x2a   :  { %392 = vmatprep.subr.mxu1 %v498_v0  ;;  %423 = vmatprep.subr.mxu0 %v498_v0 }
  0x2b   :  { %393 = vmatpush3.msra.mxu1 %v141_v11  ;;  %424 = vmatpush3.msra.mxu0 %v237_v25 }
  0x2c   :  { %394 = vmatprep.subr.mxu1 %v498_v0  ;;  %425 = vmatprep.subr.mxu0 %v498_v0 }
  0x2d   :  { %395 = vmatpush3.msra.mxu1 %v140_v12  ;;  %426 = vmatpush3.msra.mxu0 %v236_v26 }
  0x2e   :  { %396 = vmatprep.subr.mxu1 %v498_v0  ;;  %427 = vmatprep.subr.mxu0 %v498_v0 }
  0x2f   :  { %397 = vmatpush3.msra.mxu1 %v139_v13  ;;  %428 = vmatpush3.msra.mxu0 %v235_v27 }
  0x30   :  { %398 = vmatprep.subr.mxu1 %v498_v0  ;;  %429 = vmatprep.subr.mxu0 %v498_v0 }
  0x31   :  { %399 = vmatpush3.msra.mxu1 %v138_v14  ;;  %430 = vmatpush3.msra.mxu0 %v234_v28 }
  0x32   :  { %400 = vmatprep.subr.mxu1 %v498_v0  ;;  %431 = vmatprep.subr.mxu0 %v498_v0 }
  0x33   :  { %401 = vmatpush3.msra.mxu1 %v137_v15  ;;  %432 = vmatpush3.msra.mxu0 %v233_v29 }
  0x34   :  { %402 = vmatprep.subr.mxu1 %v498_v0  ;;  %433 = vmatprep.subr.mxu0 %v498_v0 }
  0x35   :  { %403 = vmatpush3.msra.mxu1 %v136_v16  ;;  %434 = vmatpush3.msra.mxu0 %v232_v30 }
  0x36   :  { %404 = vmatprep.subr.mxu1 %v498_v0  ;;  %435 = vmatprep.subr.mxu0 %v498_v0 }
  0x37   :  { %405 = vmatpush3.msra.mxu1 %v135_v17  ;;  %436 = vmatpush3.msra.mxu0 %v231_v31 }
  0x38   :  { %406 = vmatprep.subr.mxu1 %v498_v0  ;;  %437 = vmatprep.subr.mxu0 %v498_v0 }
  0x39   :  { %407 = vmatpush3.msra.mxu1 %v134_v18  ;;  %438 = vmatpush3.msra.mxu0 %v230_v37 }
  0x3a   :  { %439 = vmatprep.subr.mxu0 %v498_v0 }
  0x3b   :  { %440 = vmatpush3.msra.mxu0 %v229_v38 }
  0x3c   :  { %441 = vmatprep.subr.mxu0 %v498_v0 }
  0x3d   :  { %442 = vmatpush3.msra.mxu0 %v228_v39 }
  0xdc   :  { %v129_v33 = vpop.f32.mrf.mxu0 }
  0xdd   :  { %v130_v34 = vadd.f32 %v331_v32, %v129_v33 }
  0xde   :  { %v375_v35 = vpop.f32.mrf.mxu0 }
  0xdf   :  { %v133_v36 = vmax.f32 %v130_v34, 0.0 }
  0xe1   :  { %409 = vmatmul.mubr.f32.vlgmr.msra.gmra.mxu1 %v133_v36 }
 0x1a1   :  { %v223_v41 = vpop.f32.mrf.mxu1 }
 0x1a2   :  { %v224_v42 = vadd.f32 %v333_v40, %v223_v41 }
 0x1a3   :  { %v410_v43 = vpop.f32.mrf.mxu1 }
 0x1a4   :  { %v227_v44 = vmax.f32 %v224_v42, 0.0 }
 0x1a6   :  { %444 = vmatmul.mubr.f32.vlgmr.msra.gmra.mxu0 %v227_v44 }
 0x266   :  { %v317_v46 = vpop.f32.mrf.mxu0 }
 0x267   :  { %v318_v47 = vadd.f32 %v334_v45, %v317_v46 }
 0x268   :  { %v445_v48 = vpop.f32.mrf.mxu0 }
 0x269   :  { %450 = vtanh.f32 %v318_v47 }
 0x276   :  { %v451_v49 = vpop.eup %450 }
 0x277   :  { %v322_v50 = vmul.f32 1.5, %v451_v49 }
 0x279   :  { %324 = vst.msk [vmem:[%s700_s7] sm:$0xff] %vm323_vm2, %v322_v50 }
 0x27a   :  { %329 = vsyncpa [#allocation3], 1 }
 0x27b   :  { %330 = vsyncpa [#allocation5], 1 }

</bundles_post_ra>
